<compile_context>
chip_gen: v7x
topology: tpu7x:2x2x1
jax: 0.10.0
libtpu: 0.0.40
codegen_flags: <defaults>
</compile_context>

<pallas_src>
import functools
import math

import jax
import jax.numpy as jnp
from jax.experimental import pallas as pl
from jax.experimental.pallas import tpu as pltpu


# --------------------------------------------------------------------------
# Static "params" of the module (would come from the config object).
# --------------------------------------------------------------------------
CROP_SIZE = 8
CJ_BRIGHTNESS = 0.4
CJ_CONTRAST = 0.4
CJ_SATURATION = 0.4
CJ_HUE = 0.1
NORM_MEAN = (0.485, 0.456, 0.406)
NORM_STD = (0.229, 0.224, 0.225)
INV_STD = tuple(1.0 / s for s in NORM_STD)


# --------------------------------------------------------------------------
# Pallas kernel: NB images per grid step.
# --------------------------------------------------------------------------
def _aug_kernel(x_ref, wwt_ref, whbd_ref, j_ref, o_ref, rgb_ref, *, nb, crop):
    # x_ref    : VMEM [NB, 3*H, W]        bf16 (channels stacked along rows)
    # wwt_ref  : VMEM [NB, W, crop]       bf16
    # whbd_ref : VMEM [NB, 3*crop, 3*H]   bf16 (block-diag of Wh over channels)
    # j_ref    : VMEM [1, 4, NB*crop]     f32  (per-lane jitter factors)
    # o_ref    : VMEM [1, 3, crop, NB*crop] f32
    # rgb_ref  : VMEM scratch [3, crop, NB*crop] f32

    # ---- crop / resize / flips: 2 MXU matmuls per image ------------------
    for i in range(nb):
        t1 = jnp.dot(x_ref[i], wwt_ref[i],
                     preferred_element_type=jnp.float32)          # (3H, crop)
        y = jnp.dot(whbd_ref[i], t1.astype(jnp.bfloat16),
                    preferred_element_type=jnp.float32)           # (3crop, crop)
        rgb_ref[:, :, i * crop:(i + 1) * crop] = y.reshape(3, crop, crop)

    # ---- lane-dense elementwise color jitter + normalize ------------------
    jl = j_ref[0]                      # (4, NB*crop)
    bf = jl[0:1, :][None]              # (1, 1, NB*crop)
    cf = jl[1:2, :][None]              # (1, 1, NB*crop)
    sf = jl[2:3, :]                    # (1, NB*crop)
    hf = jl[3:4, :]                    # (1, NB*crop)

    rgb = rgb_ref[...]                 # (3, crop, NB*crop)

    # Brightness (multiplicative) then contrast (Kornia adjust_contrast:
    # straight multiplicative scale), each clamped to [0, 1].
    rgb = jnp.clip(rgb * bf, 0.0, 1.0)
    rgb = jnp.clip(rgb * cf, 0.0, 1.0)

    r = rgb[0]
    g = rgb[1]
    b = rgb[2]                         # each (crop, NB*crop)

    # RGB -> HSV (h kept in "sixths": [0, 6)).
    maxc = jnp.maximum(r, jnp.maximum(g, b))
    minc = jnp.minimum(r, jnp.minimum(g, b))
    v = maxc
    delta = maxc - minc
    s = delta * pl.reciprocal(maxc + 1e-8, approx=True)
    inv_d = pl.reciprocal(delta + 1e-8, approx=True)
    hr = (g - b) * inv_d
    hg = (b - r) * inv_d + 2.0
    hb = (r - g) * inv_d + 4.0
    h6 = jnp.where(maxc == r, hr, jnp.where(maxc == g, hg, hb))
    h6 = jnp.mod(h6, 6.0)

    # Saturation (Kornia: scale S) and hue shift (fraction of circle).
    s = jnp.clip(s * sf, 0.0, 1.0)
    h6 = jnp.mod(h6 + hf * 6.0, 6.0)

    # HSV -> RGB, arithmetic (select-free) form:
    #   chan(n) = v - v*s*clip(min(k, 4-k), 0, 1),  k = (n + 6h) mod 6
    vs = v * s

    def _chan(n):
        k = jnp.mod(n + h6, 6.0)
        return v - vs * jnp.clip(jnp.minimum(k, 4.0 - k), 0.0, 1.0)

    r = _chan(5.0)
    g = _chan(3.0)
    b = _chan(1.0)

    # Normalize (static per-channel mean / std), lane-dense stores.
    o_ref[0, 0, :, :] = (r - NORM_MEAN[0]) * INV_STD[0]
    o_ref[0, 1, :, :] = (g - NORM_MEAN[1]) * INV_STD[1]
    o_ref[0, 2, :, :] = (b - NORM_MEAN[2]) * INV_STD[2]


# --------------------------------------------------------------------------
# Plain-JAX glue: random crop / flip / jitter params and interp matrices.
# --------------------------------------------------------------------------
def _interp_matrix(start, length, src_size, out_size, flip):
    # start, length, flip: (B,). Returns (B, out_size, src_size).
    i = jnp.arange(out_size, dtype=jnp.float32)[None, :]            # (1, out)
    i = jnp.where(flip[:, None], out_size - 1.0 - i, i)             # (B, out)
    src = start[:, None] + (i + 0.5) * (length[:, None] / out_size) - 0.5
    src = jnp.clip(src, 0.0, src_size - 1.0)
    lo = jnp.floor(src)
    w = src - lo
    lo_i = lo.astype(jnp.int32)
    hi_i = jnp.minimum(lo_i + 1, src_size - 1)
    eye = jnp.eye(src_size, dtype=jnp.float32)
    return (1.0 - w)[..., None] * eye[lo_i] + w[..., None] * eye[hi_i]


def _sample_aug_params(key, B, H, W, crop):
    ks = jax.random.split(key, 10)
    scale = jax.random.uniform(ks[0], (B,), minval=0.08, maxval=1.0)
    log_ratio = jax.random.uniform(
        ks[1], (B,), minval=math.log(3.0 / 4.0), maxval=math.log(4.0 / 3.0))
    ratio = jnp.exp(log_ratio)
    area = scale * H * W
    ch = jnp.clip(jnp.sqrt(area / ratio), 1.0, float(H))
    cw = jnp.clip(jnp.sqrt(area * ratio), 1.0, float(W))
    y0 = jax.random.uniform(ks[2], (B,)) * (H - ch)
    x0 = jax.random.uniform(ks[3], (B,)) * (W - cw)
    vflip = jax.random.bernoulli(ks[4], 0.5, (B,))
    hflip = jax.random.bernoulli(ks[5], 0.5, (B,))

    wh = _interp_matrix(y0, ch, H, crop, vflip)                      # (B, crop, H)
    wwt = jnp.transpose(_interp_matrix(x0, cw, W, crop, hflip), (0, 2, 1))  # (B, W, crop)

    bf = jax.random.uniform(ks[6], (B,), minval=max(0.0, 1.0 - CJ_BRIGHTNESS),
                            maxval=1.0 + CJ_BRIGHTNESS)
    cf = jax.random.uniform(ks[7], (B,), minval=max(0.0, 1.0 - CJ_CONTRAST),
                            maxval=1.0 + CJ_CONTRAST)
    sf = jax.random.uniform(ks[8], (B,), minval=max(0.0, 1.0 - CJ_SATURATION),
                            maxval=1.0 + CJ_SATURATION)
    hf = jax.random.uniform(ks[9], (B,), minval=-CJ_HUE, maxval=CJ_HUE)
    jitter = jnp.stack([bf, cf, sf, hf], axis=1).astype(jnp.float32)  # (B, 4)
    return jitter, wh.astype(jnp.float32), wwt


def _pick_nb(B, crop, H, W):
    """Images per grid step: lane-dense target, bounded by a VMEM budget."""
    lane_target = max(1, 128 // max(crop, 1))      # NB*crop >= 128 lanes
    budget = 8 * 1024 * 1024                       # double-buffered bf16 image block
    per_img = 3 * H * W * 2 * 2
    cap = max(1, min(lane_target, budget // max(per_img, 1)))
    nb = 1
    for d in range(1, B + 1):
        if B % d == 0 and d <= cap:
            nb = d
    return nb


@functools.partial(jax.jit, static_argnames=("crop",))
def semi_sup_data_augmentation(x, key, crop=CROP_SIZE):
    B, C, H, W = x.shape
    assert C == 3, "color jitter requires 3 channels"
    NB = _pick_nb(B, crop, H, W)
    nblk = B // NB

    jitter, wh, wwt = _sample_aug_params(key, B, H, W, crop)

    # Channels stacked along rows, bf16 for the MXU / halved HBM read traffic.
    xt = x.astype(jnp.bfloat16).reshape(B, 3 * H, W)
    wwt_b = wwt.astype(jnp.bfloat16)                                  # (B, W, crop)

    # Block-diagonal Wh over channels: one matmul handles all 3 channels.
    eye3 = jnp.eye(3, dtype=jnp.float32)
    whbd = jnp.einsum("cd,bqh->bcqdh", eye3, wh).reshape(
        B, 3 * crop, 3 * H).astype(jnp.bfloat16)                      # (B, 3c, 3H)

    # Per-lane jitter factor table: (nblk, 4, NB*crop).
    jl = jnp.repeat(jitter[:, :, None], crop, axis=2)                 # (B, 4, crop)
    jl = jl.reshape(nblk, NB, 4, crop).transpose(0, 2, 1, 3)
    jl = jl.reshape(nblk, 4, NB * crop).astype(jnp.float32)

    out_stacked = pl.pallas_call(
        functools.partial(_aug_kernel, nb=NB, crop=crop),
        out_shape=jax.ShapeDtypeStruct((nblk, 3, crop, NB * crop), jnp.float32),
        grid=(nblk,),
        in_specs=[
            pl.BlockSpec((NB, 3 * H, W), lambda b: (b, 0, 0)),          # x (stacked)
            pl.BlockSpec((NB, W, crop), lambda b: (b, 0, 0)),           # WwT
            pl.BlockSpec((NB, 3 * crop, 3 * H), lambda b: (b, 0, 0)),   # Wh blockdiag
            pl.BlockSpec((1, 4, NB * crop), lambda b: (b, 0, 0)),       # jitter lanes
        ],
        out_specs=pl.BlockSpec((1, 3, crop, NB * crop), lambda b: (b, 0, 0, 0)),
        scratch_shapes=[pltpu.VMEM((3, crop, NB * crop), jnp.float32)],
        compiler_params=pltpu.CompilerParams(
            dimension_semantics=("parallel",)),
    )(xt, wwt_b, whbd, jl)

    # Un-stack the lane-dense output back to (B, 3, crop, crop).
    out = out_stacked.reshape(nblk, 3, crop, NB, crop)
    out = out.transpose(0, 3, 1, 2, 4).reshape(B, 3, crop, crop)
    return out


if __name__ == "__main__":
    key = jax.random.PRNGKey(0)
    kx, kaug = jax.random.split(key)
    x = jax.random.uniform(kx, (2, 3, 16, 16), dtype=jnp.float32)  # images in [0,1]

    out = semi_sup_data_augmentation(x, kaug)
    out = jax.block_until_ready(out)
    assert out.shape == (2, 3, CROP_SIZE, CROP_SIZE)
    assert out.dtype == jnp.float32
    assert bool(jnp.all(jnp.isfinite(out)))
    print("KERNEL_OK")
</pallas_src>

<mosaic_0001>
module attributes {stable_mosaic.version = 11 : i64} {
  func.func @_aug_kernel(%arg0: i32, %arg1: memref<2x48x16xbf16, #tpu.memory_space<vmem>>, %arg2: memref<2x16x8xbf16, #tpu.memory_space<vmem>>, %arg3: memref<2x24x48xbf16, #tpu.memory_space<vmem>>, %arg4: memref<1x4x16xf32, #tpu.memory_space<vmem>>, %arg5: memref<1x3x8x16xf32, #tpu.memory_space<vmem>>, %arg6: memref<3x8x16xf32, #tpu.memory_space<vmem>>) attributes {dimension_semantics = [#tpu.dimension_semantics<parallel>], iteration_bounds = array<i64: 1>, scalar_prefetch = 0 : i64, scratch_operands = 1 : i64, tpu.core_type = #tpu.core_type<tc>, window_params = [{transform_indices = @transform_0, window_bounds = array<i64: 2, 48, 16>}, {transform_indices = @transform_1, window_bounds = array<i64: 2, 16, 8>}, {transform_indices = @transform_2, window_bounds = array<i64: 2, 24, 48>}, {transform_indices = @transform_3, window_bounds = array<i64: 1, 4, 16>}, {transform_indices = @transform_4, window_bounds = array<i64: 1, 3, 8, 16>}]} {
    %c0 = arith.constant 0 : index
    %c0_0 = arith.constant 0 : index
    %c0_1 = arith.constant 0 : index
    %0 = vector.load %arg1[%c0, %c0_0, %c0_1] : memref<2x48x16xbf16, #tpu.memory_space<vmem>>, vector<1x48x16xbf16>
    %1 = vector.shape_cast %0 : vector<1x48x16xbf16> to vector<48x16xbf16>
    %c0_2 = arith.constant 0 : index
    %c0_3 = arith.constant 0 : index
    %c0_4 = arith.constant 0 : index
    %2 = vector.load %arg2[%c0_2, %c0_3, %c0_4] : memref<2x16x8xbf16, #tpu.memory_space<vmem>>, vector<1x16x8xbf16>
    %3 = vector.shape_cast %2 : vector<1x16x8xbf16> to vector<16x8xbf16>
    %cst = arith.constant dense<0.000000e+00> : vector<48x8xf32>
    %4 = tpu.matmul %1, %3, %cst {dimension_numbers = #tpu.dot_dimension_numbers<[1], [0], [0], [1], [0, 0, 1, 1], [], []>} : vector<48x16xbf16>, vector<16x8xbf16>, vector<48x8xf32> -> vector<48x8xf32>
    %c0_5 = arith.constant 0 : index
    %c0_6 = arith.constant 0 : index
    %c0_7 = arith.constant 0 : index
    %5 = vector.load %arg3[%c0_5, %c0_6, %c0_7] : memref<2x24x48xbf16, #tpu.memory_space<vmem>>, vector<1x24x48xbf16>
    %6 = vector.shape_cast %5 : vector<1x24x48xbf16> to vector<24x48xbf16>
    %7 = arith.truncf %4 : vector<48x8xf32> to vector<48x8xbf16>
    %cst_8 = arith.constant dense<0.000000e+00> : vector<24x8xf32>
    %8 = tpu.matmul %6, %7, %cst_8 {dimension_numbers = #tpu.dot_dimension_numbers<[1], [0], [0], [1], [0, 0, 1, 1], [], []>} : vector<24x48xbf16>, vector<48x8xbf16>, vector<24x8xf32> -> vector<24x8xf32>
    %9 = vector.shape_cast %8 : vector<24x8xf32> to vector<3x8x8xf32>
    %c0_9 = arith.constant 0 : index
    %c0_10 = arith.constant 0 : index
    %c0_11 = arith.constant 0 : index
    %10 = vector.load %arg6[%c0_9, %c0_10, %c0_11] : memref<3x8x16xf32, #tpu.memory_space<vmem>>, vector<3x8x8xf32>
    tpu.vector_store %arg6[%c0_9, %c0_10, %c0_11], %9 {strides = array<i32>} : memref<3x8x16xf32, #tpu.memory_space<vmem>>, vector<3x8x8xf32>,
    %c1 = arith.constant 1 : index
    %c0_12 = arith.constant 0 : index
    %c0_13 = arith.constant 0 : index
    %11 = vector.load %arg1[%c1, %c0_12, %c0_13] : memref<2x48x16xbf16, #tpu.memory_space<vmem>>, vector<1x48x16xbf16>
    %12 = vector.shape_cast %11 : vector<1x48x16xbf16> to vector<48x16xbf16>
    %c1_14 = arith.constant 1 : index
    %c0_15 = arith.constant 0 : index
    %c0_16 = arith.constant 0 : index
    %13 = vector.load %arg2[%c1_14, %c0_15, %c0_16] : memref<2x16x8xbf16, #tpu.memory_space<vmem>>, vector<1x16x8xbf16>
    %14 = vector.shape_cast %13 : vector<1x16x8xbf16> to vector<16x8xbf16>
    %cst_17 = arith.constant dense<0.000000e+00> : vector<48x8xf32>
    %15 = tpu.matmul %12, %14, %cst_17 {dimension_numbers = #tpu.dot_dimension_numbers<[1], [0], [0], [1], [0, 0, 1, 1], [], []>} : vector<48x16xbf16>, vector<16x8xbf16>, vector<48x8xf32> -> vector<48x8xf32>
    %c1_18 = arith.constant 1 : index
    %c0_19 = arith.constant 0 : index
    %c0_20 = arith.constant 0 : index
    %16 = vector.load %arg3[%c1_18, %c0_19, %c0_20] : memref<2x24x48xbf16, #tpu.memory_space<vmem>>, vector<1x24x48xbf16>
    %17 = vector.shape_cast %16 : vector<1x24x48xbf16> to vector<24x48xbf16>
    %18 = arith.truncf %15 : vector<48x8xf32> to vector<48x8xbf16>
    %cst_21 = arith.constant dense<0.000000e+00> : vector<24x8xf32>
    %19 = tpu.matmul %17, %18, %cst_21 {dimension_numbers = #tpu.dot_dimension_numbers<[1], [0], [0], [1], [0, 0, 1, 1], [], []>} : vector<24x48xbf16>, vector<48x8xbf16>, vector<24x8xf32> -> vector<24x8xf32>
    %20 = vector.shape_cast %19 : vector<24x8xf32> to vector<3x8x8xf32>
    %c0_22 = arith.constant 0 : index
    %c0_23 = arith.constant 0 : index
    %c8 = arith.constant 8 : index
    %21 = vector.load %arg6[%c0_22, %c0_23, %c8] : memref<3x8x16xf32, #tpu.memory_space<vmem>>, vector<3x8x8xf32>
    tpu.vector_store %arg6[%c0_22, %c0_23, %c8], %20 {strides = array<i32>} : memref<3x8x16xf32, #tpu.memory_space<vmem>>, vector<3x8x8xf32>,
    %c0_24 = arith.constant 0 : index
    %c0_25 = arith.constant 0 : index
    %c0_26 = arith.constant 0 : index
    %22 = vector.load %arg4[%c0_24, %c0_25, %c0_26] : memref<1x4x16xf32, #tpu.memory_space<vmem>>, vector<1x4x16xf32>
    %23 = vector.shape_cast %22 : vector<1x4x16xf32> to vector<4x16xf32>
    %24 = vector.extract_strided_slice %23 {offsets = [0, 0], sizes = [1, 16], strides = [1, 1]} : vector<4x16xf32> to vector<1x16xf32>
    %25 = vector.shape_cast %24 : vector<1x16xf32> to vector<1x1x16xf32>
    %26 = vector.extract_strided_slice %23 {offsets = [1, 0], sizes = [1, 16], strides = [1, 1]} : vector<4x16xf32> to vector<1x16xf32>
    %27 = vector.shape_cast %26 : vector<1x16xf32> to vector<1x1x16xf32>
    %28 = vector.extract_strided_slice %23 {offsets = [2, 0], sizes = [1, 16], strides = [1, 1]} : vector<4x16xf32> to vector<1x16xf32>
    %29 = vector.extract_strided_slice %23 {offsets = [3, 0], sizes = [1, 16], strides = [1, 1]} : vector<4x16xf32> to vector<1x16xf32>
    %c0_27 = arith.constant 0 : index
    %c0_28 = arith.constant 0 : index
    %c0_29 = arith.constant 0 : index
    %30 = vector.load %arg6[%c0_27, %c0_28, %c0_29] : memref<3x8x16xf32, #tpu.memory_space<vmem>>, vector<3x8x16xf32>
    %31 = vector.broadcast %25 : vector<1x1x16xf32> to vector<3x8x16xf32>
    %32 = arith.mulf %30, %31 : vector<3x8x16xf32>
    %cst_30 = arith.constant 0.000000e+00 : f32
    %cst_31 = arith.constant 1.000000e+00 : f32
    %33 = vector.broadcast %cst_30 : f32 to vector<3x8x16xf32>
    %34 = arith.maximumf %33, %32 : vector<3x8x16xf32>
    %35 = vector.broadcast %cst_31 : f32 to vector<3x8x16xf32>
    %36 = arith.minimumf %35, %34 : vector<3x8x16xf32>
    %37 = vector.broadcast %27 : vector<1x1x16xf32> to vector<3x8x16xf32>
    %38 = arith.mulf %36, %37 : vector<3x8x16xf32>
    %cst_32 = arith.constant 0.000000e+00 : f32
    %cst_33 = arith.constant 1.000000e+00 : f32
    %39 = vector.broadcast %cst_32 : f32 to vector<3x8x16xf32>
    %40 = arith.maximumf %39, %38 : vector<3x8x16xf32>
    %41 = vector.broadcast %cst_33 : f32 to vector<3x8x16xf32>
    %42 = arith.minimumf %41, %40 : vector<3x8x16xf32>
    %43 = vector.extract_strided_slice %42 {offsets = [0, 0, 0], sizes = [1, 8, 16], strides = [1, 1, 1]} : vector<3x8x16xf32> to vector<1x8x16xf32>
    %44 = vector.shape_cast %43 : vector<1x8x16xf32> to vector<8x16xf32>
    %45 = vector.extract_strided_slice %42 {offsets = [1, 0, 0], sizes = [1, 8, 16], strides = [1, 1, 1]} : vector<3x8x16xf32> to vector<1x8x16xf32>
    %46 = vector.shape_cast %45 : vector<1x8x16xf32> to vector<8x16xf32>
    %47 = vector.extract_strided_slice %42 {offsets = [2, 0, 0], sizes = [1, 8, 16], strides = [1, 1, 1]} : vector<3x8x16xf32> to vector<1x8x16xf32>
    %48 = vector.shape_cast %47 : vector<1x8x16xf32> to vector<8x16xf32>
    %49 = arith.maximumf %46, %48 : vector<8x16xf32>
    %50 = arith.maximumf %44, %49 : vector<8x16xf32>
    %51 = arith.minimumf %46, %48 : vector<8x16xf32>
    %52 = arith.minimumf %44, %51 : vector<8x16xf32>
    %53 = arith.subf %50, %52 : vector<8x16xf32>
    %cst_34 = arith.constant 9.99999993E-9 : f32
    %54 = vector.broadcast %cst_34 : f32 to vector<8x16xf32>
    %55 = arith.addf %50, %54 : vector<8x16xf32>
    %56 = tpu.reciprocal %55 {approx = true} : vector<8x16xf32> -> vector<8x16xf32>
    %57 = arith.mulf %53, %56 : vector<8x16xf32>
    %cst_35 = arith.constant 9.99999993E-9 : f32
    %58 = vector.broadcast %cst_35 : f32 to vector<8x16xf32>
    %59 = arith.addf %53, %58 : vector<8x16xf32>
    %60 = tpu.reciprocal %59 {approx = true} : vector<8x16xf32> -> vector<8x16xf32>
    %61 = arith.subf %46, %48 : vector<8x16xf32>
    %62 = arith.mulf %61, %60 : vector<8x16xf32>
    %63 = arith.subf %48, %44 : vector<8x16xf32>
    %64 = arith.mulf %63, %60 : vector<8x16xf32>
    %cst_36 = arith.constant 2.000000e+00 : f32
    %65 = vector.broadcast %cst_36 : f32 to vector<8x16xf32>
    %66 = arith.addf %64, %65 : vector<8x16xf32>
    %67 = arith.subf %44, %46 : vector<8x16xf32>
    %68 = arith.mulf %67, %60 : vector<8x16xf32>
    %cst_37 = arith.constant 4.000000e+00 : f32
    %69 = vector.broadcast %cst_37 : f32 to vector<8x16xf32>
    %70 = arith.addf %68, %69 : vector<8x16xf32>
    %71 = arith.cmpf oeq, %50, %44 : vector<8x16xf32>
    %72 = arith.cmpf oeq, %50, %46 : vector<8x16xf32>
    %73 = arith.select %72, %66, %70 : vector<8x16xi1>, vector<8x16xf32>
    %74 = arith.select %71, %62, %73 : vector<8x16xi1>, vector<8x16xf32>
    %cst_38 = arith.constant 6.000000e+00 : f32
    %75 = vector.broadcast %cst_38 : f32 to vector<8x16xf32>
    %76 = arith.remf %74, %75 : vector<8x16xf32>
    %cst_39 = arith.constant 0.000000e+00 : f32
    %77 = vector.broadcast %cst_39 : f32 to vector<8x16xf32>
    %78 = arith.cmpf one, %76, %77 : vector<8x16xf32>
    %cst_40 = arith.constant 0.000000e+00 : f32
    %79 = vector.broadcast %cst_40 : f32 to vector<8x16xf32>
    %80 = arith.cmpf olt, %76, %79 : vector<8x16xf32>
    %cst_41 = arith.constant 0.000000e+00 : f32
    %81 = arith.cmpf olt, %cst_38, %cst_41 : f32
    %82 = vector.broadcast %81 : i1 to vector<8x16xi1>
    %83 = vector.broadcast %82 : vector<8x16xi1> to vector<8x16xi1>
    %84 = arith.xori %80, %83 : vector<8x16xi1>
    %85 = arith.andi %84, %78 : vector<8x16xi1>
    %86 = vector.broadcast %cst_38 : f32 to vector<8x16xf32>
    %87 = arith.addf %76, %86 : vector<8x16xf32>
    %88 = arith.select %85, %87, %76 : vector<8x16xi1>, vector<8x16xf32>
    %89 = vector.broadcast %28 : vector<1x16xf32> to vector<8x16xf32>
    %90 = arith.mulf %57, %89 : vector<8x16xf32>
    %cst_42 = arith.constant 0.000000e+00 : f32
    %cst_43 = arith.constant 1.000000e+00 : f32
    %91 = vector.broadcast %cst_42 : f32 to vector<8x16xf32>
    %92 = arith.maximumf %91, %90 : vector<8x16xf32>
    %93 = vector.broadcast %cst_43 : f32 to vector<8x16xf32>
    %94 = arith.minimumf %93, %92 : vector<8x16xf32>
    %cst_44 = arith.constant 6.000000e+00 : f32
    %95 = vector.broadcast %cst_44 : f32 to vector<1x16xf32>
    %96 = arith.mulf %29, %95 : vector<1x16xf32>
    %97 = vector.broadcast %96 : vector<1x16xf32> to vector<8x16xf32>
    %98 = arith.addf %88, %97 : vector<8x16xf32>
    %cst_45 = arith.constant 6.000000e+00 : f32
    %99 = vector.broadcast %cst_45 : f32 to vector<8x16xf32>
    %100 = arith.remf %98, %99 : vector<8x16xf32>
    %cst_46 = arith.constant 0.000000e+00 : f32
    %101 = vector.broadcast %cst_46 : f32 to vector<8x16xf32>
    %102 = arith.cmpf one, %100, %101 : vector<8x16xf32>
    %cst_47 = arith.constant 0.000000e+00 : f32
    %103 = vector.broadcast %cst_47 : f32 to vector<8x16xf32>
    %104 = arith.cmpf olt, %100, %103 : vector<8x16xf32>
    %cst_48 = arith.constant 0.000000e+00 : f32
    %105 = arith.cmpf olt, %cst_45, %cst_48 : f32
    %106 = vector.broadcast %105 : i1 to vector<8x16xi1>
    %107 = vector.broadcast %106 : vector<8x16xi1> to vector<8x16xi1>
    %108 = arith.xori %104, %107 : vector<8x16xi1>
    %109 = arith.andi %108, %102 : vector<8x16xi1>
    %110 = vector.broadcast %cst_45 : f32 to vector<8x16xf32>
    %111 = arith.addf %100, %110 : vector<8x16xf32>
    %112 = arith.select %109, %111, %100 : vector<8x16xi1>, vector<8x16xf32>
    %113 = arith.mulf %50, %94 : vector<8x16xf32>
    %cst_49 = arith.constant 5.000000e+00 : f32
    %114 = vector.broadcast %cst_49 : f32 to vector<8x16xf32>
    %115 = arith.addf %114, %112 : vector<8x16xf32>
    %cst_50 = arith.constant 6.000000e+00 : f32
    %116 = vector.broadcast %cst_50 : f32 to vector<8x16xf32>
    %117 = arith.remf %115, %116 : vector<8x16xf32>
    %cst_51 = arith.constant 0.000000e+00 : f32
    %118 = vector.broadcast %cst_51 : f32 to vector<8x16xf32>
    %119 = arith.cmpf one, %117, %118 : vector<8x16xf32>
    %cst_52 = arith.constant 0.000000e+00 : f32
    %120 = vector.broadcast %cst_52 : f32 to vector<8x16xf32>
    %121 = arith.cmpf olt, %117, %120 : vector<8x16xf32>
    %cst_53 = arith.constant 0.000000e+00 : f32
    %122 = arith.cmpf olt, %cst_50, %cst_53 : f32
    %123 = vector.broadcast %122 : i1 to vector<8x16xi1>
    %124 = vector.broadcast %123 : vector<8x16xi1> to vector<8x16xi1>
    %125 = arith.xori %121, %124 : vector<8x16xi1>
    %126 = arith.andi %125, %119 : vector<8x16xi1>
    %127 = vector.broadcast %cst_50 : f32 to vector<8x16xf32>
    %128 = arith.addf %117, %127 : vector<8x16xf32>
    %129 = arith.select %126, %128, %117 : vector<8x16xi1>, vector<8x16xf32>
    %cst_54 = arith.constant 4.000000e+00 : f32
    %130 = vector.broadcast %cst_54 : f32 to vector<8x16xf32>
    %131 = arith.subf %130, %129 : vector<8x16xf32>
    %132 = arith.minimumf %129, %131 : vector<8x16xf32>
    %cst_55 = arith.constant 0.000000e+00 : f32
    %cst_56 = arith.constant 1.000000e+00 : f32
    %133 = vector.broadcast %cst_55 : f32 to vector<8x16xf32>
    %134 = arith.maximumf %133, %132 : vector<8x16xf32>
    %135 = vector.broadcast %cst_56 : f32 to vector<8x16xf32>
    %136 = arith.minimumf %135, %134 : vector<8x16xf32>
    %137 = arith.mulf %113, %136 : vector<8x16xf32>
    %138 = arith.subf %50, %137 : vector<8x16xf32>
    %cst_57 = arith.constant 3.000000e+00 : f32
    %139 = vector.broadcast %cst_57 : f32 to vector<8x16xf32>
    %140 = arith.addf %139, %112 : vector<8x16xf32>
    %cst_58 = arith.constant 6.000000e+00 : f32
    %141 = vector.broadcast %cst_58 : f32 to vector<8x16xf32>
    %142 = arith.remf %140, %141 : vector<8x16xf32>
    %cst_59 = arith.constant 0.000000e+00 : f32
    %143 = vector.broadcast %cst_59 : f32 to vector<8x16xf32>
    %144 = arith.cmpf one, %142, %143 : vector<8x16xf32>
    %cst_60 = arith.constant 0.000000e+00 : f32
    %145 = vector.broadcast %cst_60 : f32 to vector<8x16xf32>
    %146 = arith.cmpf olt, %142, %145 : vector<8x16xf32>
    %cst_61 = arith.constant 0.000000e+00 : f32
    %147 = arith.cmpf olt, %cst_58, %cst_61 : f32
    %148 = vector.broadcast %147 : i1 to vector<8x16xi1>
    %149 = vector.broadcast %148 : vector<8x16xi1> to vector<8x16xi1>
    %150 = arith.xori %146, %149 : vector<8x16xi1>
    %151 = arith.andi %150, %144 : vector<8x16xi1>
    %152 = vector.broadcast %cst_58 : f32 to vector<8x16xf32>
    %153 = arith.addf %142, %152 : vector<8x16xf32>
    %154 = arith.select %151, %153, %142 : vector<8x16xi1>, vector<8x16xf32>
    %cst_62 = arith.constant 4.000000e+00 : f32
    %155 = vector.broadcast %cst_62 : f32 to vector<8x16xf32>
    %156 = arith.subf %155, %154 : vector<8x16xf32>
    %157 = arith.minimumf %154, %156 : vector<8x16xf32>
    %cst_63 = arith.constant 0.000000e+00 : f32
    %cst_64 = arith.constant 1.000000e+00 : f32
    %158 = vector.broadcast %cst_63 : f32 to vector<8x16xf32>
    %159 = arith.maximumf %158, %157 : vector<8x16xf32>
    %160 = vector.broadcast %cst_64 : f32 to vector<8x16xf32>
    %161 = arith.minimumf %160, %159 : vector<8x16xf32>
    %162 = arith.mulf %113, %161 : vector<8x16xf32>
    %163 = arith.subf %50, %162 : vector<8x16xf32>
    %cst_65 = arith.constant 1.000000e+00 : f32
    %164 = vector.broadcast %cst_65 : f32 to vector<8x16xf32>
    %165 = arith.addf %164, %112 : vector<8x16xf32>
    %cst_66 = arith.constant 6.000000e+00 : f32
    %166 = vector.broadcast %cst_66 : f32 to vector<8x16xf32>
    %167 = arith.remf %165, %166 : vector<8x16xf32>
    %cst_67 = arith.constant 0.000000e+00 : f32
    %168 = vector.broadcast %cst_67 : f32 to vector<8x16xf32>
    %169 = arith.cmpf one, %167, %168 : vector<8x16xf32>
    %cst_68 = arith.constant 0.000000e+00 : f32
    %170 = vector.broadcast %cst_68 : f32 to vector<8x16xf32>
    %171 = arith.cmpf olt, %167, %170 : vector<8x16xf32>
    %cst_69 = arith.constant 0.000000e+00 : f32
    %172 = arith.cmpf olt, %cst_66, %cst_69 : f32
    %173 = vector.broadcast %172 : i1 to vector<8x16xi1>
    %174 = vector.broadcast %173 : vector<8x16xi1> to vector<8x16xi1>
    %175 = arith.xori %171, %174 : vector<8x16xi1>
    %176 = arith.andi %175, %169 : vector<8x16xi1>
    %177 = vector.broadcast %cst_66 : f32 to vector<8x16xf32>
    %178 = arith.addf %167, %177 : vector<8x16xf32>
    %179 = arith.select %176, %178, %167 : vector<8x16xi1>, vector<8x16xf32>
    %cst_70 = arith.constant 4.000000e+00 : f32
    %180 = vector.broadcast %cst_70 : f32 to vector<8x16xf32>
    %181 = arith.subf %180, %179 : vector<8x16xf32>
    %182 = arith.minimumf %179, %181 : vector<8x16xf32>
    %cst_71 = arith.constant 0.000000e+00 : f32
    %cst_72 = arith.constant 1.000000e+00 : f32
    %183 = vector.broadcast %cst_71 : f32 to vector<8x16xf32>
    %184 = arith.maximumf %183, %182 : vector<8x16xf32>
    %185 = vector.broadcast %cst_72 : f32 to vector<8x16xf32>
    %186 = arith.minimumf %185, %184 : vector<8x16xf32>
    %187 = arith.mulf %113, %186 : vector<8x16xf32>
    %188 = arith.subf %50, %187 : vector<8x16xf32>
    %cst_73 = arith.constant 4.850000e-01 : f32
    %189 = vector.broadcast %cst_73 : f32 to vector<8x16xf32>
    %190 = arith.subf %138, %189 : vector<8x16xf32>
    %cst_74 = arith.constant 4.36681223 : f32
    %191 = vector.broadcast %cst_74 : f32 to vector<8x16xf32>
    %192 = arith.mulf %190, %191 : vector<8x16xf32>
    %c0_75 = arith.constant 0 : index
    %c0_76 = arith.constant 0 : index
    %c0_77 = arith.constant 0 : index
    %c0_78 = arith.constant 0 : index
    %193 = vector.load %arg5[%c0_75, %c0_76, %c0_77, %c0_78] : memref<1x3x8x16xf32, #tpu.memory_space<vmem>>, vector<1x1x8x16xf32>
    %194 = vector.shape_cast %193 : vector<1x1x8x16xf32> to vector<8x16xf32>
    %195 = vector.shape_cast %192 : vector<8x16xf32> to vector<1x1x8x16xf32>
    tpu.vector_store %arg5[%c0_75, %c0_76, %c0_77, %c0_78], %195 {strides = array<i32>} : memref<1x3x8x16xf32, #tpu.memory_space<vmem>>, vector<1x1x8x16xf32>,
    %cst_79 = arith.constant 4.560000e-01 : f32
    %196 = vector.broadcast %cst_79 : f32 to vector<8x16xf32>
    %197 = arith.subf %163, %196 : vector<8x16xf32>
    %cst_80 = arith.constant 4.46428585 : f32
    %198 = vector.broadcast %cst_80 : f32 to vector<8x16xf32>
    %199 = arith.mulf %197, %198 : vector<8x16xf32>
    %c0_81 = arith.constant 0 : index
    %c1_82 = arith.constant 1 : index
    %c0_83 = arith.constant 0 : index
    %c0_84 = arith.constant 0 : index
    %200 = vector.load %arg5[%c0_81, %c1_82, %c0_83, %c0_84] : memref<1x3x8x16xf32, #tpu.memory_space<vmem>>, vector<1x1x8x16xf32>
    %201 = vector.shape_cast %200 : vector<1x1x8x16xf32> to vector<8x16xf32>
    %202 = vector.shape_cast %199 : vector<8x16xf32> to vector<1x1x8x16xf32>
    tpu.vector_store %arg5[%c0_81, %c1_82, %c0_83, %c0_84], %202 {strides = array<i32>} : memref<1x3x8x16xf32, #tpu.memory_space<vmem>>, vector<1x1x8x16xf32>,
    %cst_85 = arith.constant 4.060000e-01 : f32
    %203 = vector.broadcast %cst_85 : f32 to vector<8x16xf32>
    %204 = arith.subf %188, %203 : vector<8x16xf32>
    %cst_86 = arith.constant 4.44444466 : f32
    %205 = vector.broadcast %cst_86 : f32 to vector<8x16xf32>
    %206 = arith.mulf %204, %205 : vector<8x16xf32>
    %c0_87 = arith.constant 0 : index
    %c2 = arith.constant 2 : index
    %c0_88 = arith.constant 0 : index
    %c0_89 = arith.constant 0 : index
    %207 = vector.load %arg5[%c0_87, %c2, %c0_88, %c0_89] : memref<1x3x8x16xf32, #tpu.memory_space<vmem>>, vector<1x1x8x16xf32>
    %208 = vector.shape_cast %207 : vector<1x1x8x16xf32> to vector<8x16xf32>
    %209 = vector.shape_cast %206 : vector<8x16xf32> to vector<1x1x8x16xf32>
    tpu.vector_store %arg5[%c0_87, %c2, %c0_88, %c0_89], %209 {strides = array<i32>} : memref<1x3x8x16xf32, #tpu.memory_space<vmem>>, vector<1x1x8x16xf32>,
    return
  }
  func.func @transform_0(%arg0: i32) -> (i32, i32, i32) {
    %c0_i32 = arith.constant 0 : i32
    %c0_i32_0 = arith.constant 0 : i32
    %c0_i32_1 = arith.constant 0 : i32
    return %arg0, %c0_i32, %c0_i32_0 : i32, i32, i32
  }
  func.func @transform_1(%arg0: i32) -> (i32, i32, i32) {
    %c0_i32 = arith.constant 0 : i32
    %c0_i32_0 = arith.constant 0 : i32
    %c0_i32_1 = arith.constant 0 : i32
    return %arg0, %c0_i32, %c0_i32_0 : i32, i32, i32
  }
  func.func @transform_2(%arg0: i32) -> (i32, i32, i32) {
    %c0_i32 = arith.constant 0 : i32
    %c0_i32_0 = arith.constant 0 : i32
    %c0_i32_1 = arith.constant 0 : i32
    return %arg0, %c0_i32, %c0_i32_0 : i32, i32, i32
  }
  func.func @transform_3(%arg0: i32) -> (i32, i32, i32) {
    %c0_i32 = arith.constant 0 : i32
    %c0_i32_0 = arith.constant 0 : i32
    %c0_i32_1 = arith.constant 0 : i32
    return %arg0, %c0_i32, %c0_i32_0 : i32, i32, i32
  }
  func.func @transform_4(%arg0: i32) -> (i32, i32, i32, i32) {
    %c0_i32 = arith.constant 0 : i32
    %c0_i32_0 = arith.constant 0 : i32
    %c0_i32_1 = arith.constant 0 : i32
    %c0_i32_2 = arith.constant 0 : i32
    return %arg0, %c0_i32, %c0_i32_0, %c0_i32_1 : i32, i32, i32, i32
  }
}

</mosaic_0001>

<bundles_post_ra>
// kernel: semi_sup_data_augmentation.1
= control target key start
LH: loop header
LB: loop body
LE: loop exit
PB: predicated region body
PF: predicated region fallthrough
CT: control target
= control target key end

     0   :  { %v674_v0 = vmov 0.0   ;;  %vm675_vm0 = vmmov 0   ;;  %vm47_vm1 = vcmask 130048   ;;  %vm128_vm2 = vcmask 392192   ;;  %s676_s13 = smov 8   ;;  %s794_s1 = inlined_call_operand.vmem [shape: bf16[2,16,8], index: 1, kind: input, shape index: {}]   ;;  %s795_s0 = inlined_call_operand.vmem [shape: bf16[2,48,16], index: 0, kind: input, shape index: {}]   ;;  %s796_s2 = inlined_call_operand.vmem [shape: bf16[2,24,48], index: 2, kind: input, shape index: {}]   ;;  %s797_s3 = inlined_call_operand.vmem [shape: f32[1,4,16], index: 3, kind: input, shape index: {}]   ;;  %s798_s4 = inlined_call_operand.vmem [shape: f32[1,3,8,16], index: 4, kind: output, shape index: {}]  }
   0x1   :  { %607 = vmatprep.subr.bf16.mxu0 %v674_v0  ;;  %v658_v1 = vld [vmem:[%s794_s1] sm:$0xff]   ;;  %609 = vmatprep.mubr.msk.bf16.mxu0 %vm675_vm0, %v674_v0  ;;  %v660_v3 = vld [vmem:[%s795_s0 + $0x8] sm:$0xff]   ;;  %v661_v4 = vld [vmem:[%s795_s0 + $0x10] sm:$0xff]   ;;  %vm183_vm3 = vcmask 64512   ;;  %v373_v47 = vlaneseq  ;;  %vm365_vm4 = vcmask 130112  }
   0x2   :  { %v659_v2 = vld [vmem:[%s795_s0] sm:$0xff]   ;;  %608 = vmatpush3.bf16.msra.mxu0 %v658_v1  ;;  %v663_v21 = vld [vmem:[%s796_s2 + $0x8] ss:$0 sps:$4 sm:$0xff]   ;;  %v665_v23 = vld [vmem:[%s795_s0 + $0x18] sm:$0xff]  }
   0x3   :  { %v662_v5 = vld [vmem:[%s796_s2] sm:$0xff]   ;;  %v664_v22 = vld [vmem:[%s794_s1 + $0x8] sm:$0xff]   ;;  %v669_v46 = vld [vmem:[%s796_s2 + $0x14] ss:$0 sps:$4 sm:$0xff]   ;;  %v754_v48 = vshrl.u32 %v373_v47, 7 }
   0x4   :  { %627 = vmatprep.mubr.msk.bf16.mxu1 %vm128_vm2, %v662_v5  ;;  %v666_v24 = vld [vmem:[%s795_s0 + $0x20] sm:$0xff]   ;;  %v667_v25 = vld [vmem:[%s795_s0 + $0x28] sm:$0xff]  }
   0x5   :  { %610 = vmatmul.mubr.msk.bf16.vlgmr.msra.gmra.mrb[0].mxu0 %vm47_vm1, %v659_v2  ;;  %v668_v26 = vld [vmem:[%s796_s2 + $0xc] sm:$0xff]   ;;  %v439_v49 = vsub.s32 2, %v754_v48  ;;  %v760_v50 = vld [vmem:[%s797_s3] sm:$0xf]  ;;  %v375_v57 = vsub.s32 0, %v754_v48  ;;  %v447_v47 = vsub.s32 3, %v754_v48 }
   0x6   :  { %613 = vmatprep.mubr.msk.bf16.mxu0 %vm675_vm0, %v674_v0 }
   0x7   :  { %v440_v51 = vrot.slane %v760_v50, %v439_v49  ;;  %v376_v59 = vrot.slane %v760_v50, %v375_v57 }
   0xd   :  { %614 = vmatmul.mubr.msk.bf16.gmra.mrb[4].mxu0 %vm47_vm1, %v660_v3 }
   0xe   :  { %617 = vmatprep.mubr.msk.bf16.mxu0 %vm675_vm0, %v674_v0 }
  0x15   :  { %618 = vmatmul.mubr.msk.bf16.gmra.mrb[8].mxu0 %vm47_vm1, %v661_v4 }
  0x16   :  { %651 = vmatprep.mubr.msk.bf16.mxu0 %vm128_vm2, %v668_v26 }
  0xd8   :  { %v91_v6 = vpop.f32.mrb[0].mxu0 }
  0xd9   :  { %v611_v7 = vpop.f32.mrb[1].mxu0 }
  0xda   :  { %v94_v8 = vpop.f32.mrb[2].mxu0 }
  0xdb   :  { %v117_v9 = vpack.c.bf16 %v94_v8, %v91_v6  ;;  %v612_v10 = vpop.f32.mrb[3].mxu0 }
  0xdd   :  { %621 = vmatprep.subr.bf16.mxu1 %v117_v9 }
  0xde   :  { %622 = vmatpush3.bf16.msra.mxu1 %v117_v9 }
  0xe0   :  { %v99_v11 = vpop.f32.mrb[4].mxu0 }
  0xe1   :  { %v615_v12 = vpop.f32.mrb[5].mxu0 }
  0xe2   :  { %v102_v13 = vpop.f32.mrb[6].mxu0 }
  0xe3   :  { %v118_v14 = vpack.c.bf16 %v102_v13, %v99_v11  ;;  %v616_v15 = vpop.f32.mrb[7].mxu0 }
  0xe5   :  { %623 = vmatprep.subr.bf16.mxu1 %v118_v14 }
  0xe6   :  { %624 = vmatpush3.bf16.msra.mxu1 %v118_v14 }
  0xe8   :  { %v107_v16 = vpop.f32.mrb[8].mxu0 }
  0xe9   :  { %v619_v17 = vpop.f32.mrb[9].mxu0 }
  0xea   :  { %v110_v18 = vpop.f32.mrb[10].mxu0 }
  0xeb   :  { %v119_v19 = vpack.c.bf16 %v110_v18, %v107_v16  ;;  %v620_v20 = vpop.f32.mrb[11].mxu0 }
  0xed   :  { %625 = vmatprep.subr.bf16.mxu1 %v119_v19 }
  0xee   :  { %626 = vmatpush3.bf16.msra.mxu1 %v119_v19 }
  0xef   :  { %631 = vmatprep.subr.bf16.mxu1 %v674_v0 }
  0xf1   :  { %628 = vmatmul.mubr.msk.bf16.vlgmr.msra.gmra.mrb[0].mxu1 %vm128_vm2, %v663_v21 }
  0xf2   :  { %632 = vmatpush3.bf16.msra.mxu1 %v664_v22  ;;  %633 = vmatprep.mubr.msk.bf16.mxu1 %vm675_vm0, %v674_v0 }
  0xf9   :  { %634 = vmatmul.mubr.msk.bf16.vlgmr.msra.gmra.mrb[4].mxu1 %vm47_vm1, %v665_v23 }
  0xfa   :  { %637 = vmatprep.mubr.msk.bf16.mxu1 %vm675_vm0, %v674_v0 }
 0x101   :  { %638 = vmatmul.mubr.msk.bf16.gmra.mrb[8].mxu1 %vm47_vm1, %v666_v24 }
 0x102   :  { %641 = vmatprep.mubr.msk.bf16.mxu1 %vm675_vm0, %v674_v0  ;;  %v388_v0 = vsub.s32 1, %v754_v48 }
 0x104   :  { %v389_v5 = vrot.slane %v760_v50, %v388_v0 }
 0x109   :  { %642 = vmatmul.mubr.msk.bf16.gmra.mrb[12].mxu1 %vm47_vm1, %v667_v25 }
 0x1c4   :  { %v629_v27 = vpop.f32.mrb[0].mxu1 }
 0x1c5   :  { %186 = vst.msk [vmem:[#allocation2 + $0x10] sm:$0xff] %vm183_vm3, %v629_v27  ;;  %v169_v28 = vpop.f32.mrb[1].mxu1 }
 0x1c6   :  { %184 = vst.msk [vmem:[#allocation2] sm:$0xff] %vm183_vm3, %v169_v28  ;;  %v630_v29 = vpop.f32.mrb[2].mxu1 }
 0x1c7   :  { %v172_v30 = vpop.f32.mrb[3].mxu1 }
 0x1c8   :  { %185 = vst.msk [vmem:[#allocation2 + $0x8] sm:$0xff] %vm183_vm3, %v172_v30 }
 0x1cc   :  { %v261_v31 = vpop.f32.mrb[4].mxu1 }
 0x1cd   :  { %v635_v32 = vpop.f32.mrb[5].mxu1 }
 0x1ce   :  { %v264_v33 = vpop.f32.mrb[6].mxu1 }
 0x1cf   :  { %v288_v34 = vpack.c.bf16 %v264_v33, %v261_v31  ;;  %v636_v35 = vpop.f32.mrb[7].mxu1 }
 0x1d1   :  { %645 = vmatprep.subr.bf16.mxu0 %v288_v34 }
 0x1d2   :  { %646 = vmatpush3.bf16.msra.mxu0 %v288_v34 }
 0x1d4   :  { %v269_v36 = vpop.f32.mrb[8].mxu1 }
 0x1d5   :  { %v639_v37 = vpop.f32.mrb[9].mxu1 }
 0x1d6   :  { %v272_v38 = vpop.f32.mrb[10].mxu1 }
 0x1d7   :  { %v289_v39 = vpack.c.bf16 %v272_v38, %v269_v36  ;;  %v640_v40 = vpop.f32.mrb[11].mxu1 }
 0x1d9   :  { %647 = vmatprep.subr.bf16.mxu0 %v289_v39 }
 0x1da   :  { %648 = vmatpush3.bf16.msra.mxu0 %v289_v39 }
 0x1dc   :  { %v277_v41 = vpop.f32.mrb[12].mxu1 }
 0x1dd   :  { %v643_v42 = vpop.f32.mrb[13].mxu1 }
 0x1de   :  { %v280_v43 = vpop.f32.mrb[14].mxu1 }
 0x1df   :  { %v290_v44 = vpack.c.bf16 %v280_v43, %v277_v41  ;;  %v644_v45 = vpop.f32.mrb[15].mxu1 }
 0x1e1   :  { %649 = vmatprep.subr.bf16.mxu0 %v290_v44 }
 0x1e2   :  { %650 = vmatpush3.bf16.msra.mxu0 %v290_v44 }
 0x1e5   :  { %652 = vmatmul.mubr.msk.bf16.vlgmr.msra.gmra.mrb[12].mxu0 %vm128_vm2, %v669_v46  ;;  %v444_v46 = vmul.f32 6.0, %v760_v50 }
 0x2b8   :  { %v653_v52 = vpop.f32.mrb[12].mxu0 }
 0x2b9   :  { %v339_v53 = vpop.f32.mrb[13].mxu0 }
 0x2ba   :  { %v654_v54 = vpop.f32.mrb[14].mxu0  ;;  %356 = vrot.lane.b32.xlu1 %v339_v53, %s676_s13 }
 0x2bb   :  { %v342_v55 = vpop.f32.mrb[15].mxu0  ;;  %v448_v54 = vrot.slane %v444_v46, %v447_v47 }
 0x2bc   :  { %358 = vrot.lane.b32.xlu0 %v342_v55, %s676_s13 }
 0x2c0   :  { %360 = vrot.lane.b32.xlu0 %v653_v52, %s676_s13 }
 0x32c   :  { %v357_v56 = vpop.permute.xlu1 %356 }
 0x32d   :  { %366 = vst.msk [vmem:[#allocation2] sm:$0xff] %vm365_vm4, %v357_v56 }
 0x32e   :  { %v359_v58 = vpop.permute.xlu0 %358 }
 0x32f   :  { %367 = vst.msk [vmem:[#allocation2 + $0x8] sm:$0xff] %vm365_vm4, %v359_v58 }
 0x332   :  { %v361_v60 = vpop.permute.xlu0 %360 }
 0x333   :  { %368 = vst.msk [vmem:[#allocation2 + $0x10] sm:$0xff] %vm365_vm4, %v361_v60 }
 0x334   :  { %v370_v61 = vld [vmem:[#allocation2] sm:$0xff] }
 0x335   :  { %v377_v62 = vmul.f32 %v376_v59, %v370_v61 }
 0x336   :  { %v371_v63 = vld [vmem:[#allocation2 + $0x8] sm:$0xff] }
 0x337   :  { %v378_v1 = vmul.f32 %v376_v59, %v371_v63  ;;  %v380_v2 = vmax.f32 %v377_v62, 0.0 }
 0x339   :  { %v381_v3 = vmax.f32 %v378_v1, 0.0  ;;  %v383_v7 = vmin.f32 %v380_v2, 1.0 }
 0x33a   :  { %v372_v4 = vld [vmem:[#allocation2 + $0x10] sm:$0xff] }
 0x33b   :  { %v384_v6 = vmin.f32 %v381_v3, 1.0  ;;  %v379_v8 = vmul.f32 %v376_v59, %v372_v4  ;;  %v390_v11 = vmul.f32 %v389_v5, %v383_v7 }
 0x33d   :  { %v391_v9 = vmul.f32 %v389_v5, %v384_v6  ;;  %v382_v10 = vmax.f32 %v379_v8, 0.0  ;;  %v393_v15 = vmax.f32 %v390_v11, 0.0 }
 0x33f   :  { %v385_v12 = vmin.f32 %v382_v10, 1.0  ;;  %v394_v13 = vmax.f32 %v391_v9, 0.0  ;;  %v396_v19 = vmin.f32 %v393_v15, 1.0 }
 0x341   :  { %v392_v14 = vmul.f32 %v389_v5, %v385_v12  ;;  %v397_v17 = vmin.f32 %v394_v13, 1.0 }
 0x343   :  { %v395_v16 = vmax.f32 %v392_v14, 0.0  ;;  %v414_v28 = vsub.f32 %v396_v19, %v397_v17 }
 0x345   :  { %v398_v18 = vmin.f32 %v395_v16, 1.0 }
 0x347   :  { %v399_v20 = vmax.f32 %v397_v17, %v398_v18  ;;  %v401_v21 = vmin.f32 %v397_v17, %v398_v18  ;;  %v411_v30 = vsub.f32 %v398_v18, %v396_v19  ;;  %v409_v35 = vsub.f32 %v397_v17, %v398_v18 }
 0x349   :  { %v767_v22 = vmax.f32 %v396_v19, %v399_v20  ;;  %v402_v23 = vmin.f32 %v396_v19, %v401_v21 }
 0x34b   :  { %v403_v24 = vsub.f32 %v767_v22, %v402_v23  ;;  %v404_v25 = vadd.f32 1e-08, %v767_v22  ;;  %vm418_vm5 = vcmp.eq.f32.partialorder %v767_v22, %v397_v17  ;;  %vm417_vm6 = vcmp.eq.f32.partialorder %v767_v22, %v396_v19 }
 0x34d   :  { %670 = vrcp.f32 %v404_v25  ;;  %v407_v26 = vadd.f32 1e-08, %v403_v24 }
 0x34f   :  { %672 = vrcp.f32 %v407_v26 }
 0x357   :  { %v671_v27 = vpop.eup %670 }
 0x358   :  { %v406_v29 = vmul.f32 %v671_v27, %v403_v24 }
 0x359   :  { %v673_v31 = vpop.eup %672 }
 0x35a   :  { %v412_v32 = vmul.f32 %v673_v31, %v411_v30  ;;  %v415_v33 = vmul.f32 %v673_v31, %v414_v28  ;;  %v771_v34 = vmul.f32 %v440_v51, %v406_v29  ;;  %v410_v38 = vmul.f32 %v673_v31, %v409_v35 }
 0x35c   :  { %v413_v36 = vadd.f32 2.0, %v412_v32  ;;  %v416_v37 = vadd.f32 4.0, %v415_v33  ;;  %v442_v33 = vmax.f32 %v771_v34, 0.0 }
 0x35e   :  { %v419_v39 = vsel %vm418_vm5, %v413_v36, %v416_v37 }
 0x35f   :  { %v420_v40 = vsel %vm417_vm6, %v410_v38, %v419_v39 }
 0x360   :  { %v421_v41 = vand.u32 2147483647, %v420_v40  ;;  %v430_v52 = vand.u32 2147483648, %v420_v40 }
 0x362   :  { %v423_v42 = vmul.f32 0.16666667, %v421_v41 }
 0x364   :  { %v424_v43 = vfloor.f32 %v423_v42 }
 0x366   :  { %v425_v44 = vmul.f32 6.0, %v424_v43 }
 0x368   :  { %v426_v45 = vsub.f32 %v421_v41, %v425_v44  ;;  %v443_v44 = vmin.f32 %v442_v33, 1.0 }
 0x36a   :  { %vm427_vm7 = vcmp.eq.f32.partialorder %v426_v45, 6.0 }
 0x36b   :  { %v428_v49 = vsel %vm427_vm7, 0.0, %v426_v45 }
 0x36c   :  { %v429_v51 = vand.u32 2147483647, %v428_v49 }
 0x36e   :  { %v431_v53 = vor.u32 %v430_v52, %v429_v51  ;;  %v466_v52 = vmul.f32 %v443_v44, %v767_v22 }
 0x370   :  { %vm432_vm8 = vcmp.ne.f32.partialorder %v431_v53, 0.0  ;;  %vm433_vm9 = vcmp.lt.f32.partialorder %v431_v53, 0.0  ;;  %v435_v55 = vadd.f32 6.0, %v431_v53 }
 0x371   :  { %vm434_vm10 = vmand %vm433_vm9, %vm432_vm8 }
 0x372   :  { %v436_v56 = vsel %vm434_vm10, %v435_v55, %v431_v53 }
 0x373   :  { %v449_v57 = vadd.f32 %v448_v54, %v436_v56 }
 0x375   :  { %v450_v58 = vand.u32 2147483647, %v449_v57  ;;  %v459_v48 = vand.u32 2147483648, %v449_v57 }
 0x377   :  { %v452_v59 = vmul.f32 0.16666667, %v450_v58 }
 0x379   :  { %v453_v60 = vfloor.f32 %v452_v59 }
 0x37b   :  { %v454_v61 = vmul.f32 6.0, %v453_v60 }
 0x37d   :  { %v455_v62 = vsub.f32 %v450_v58, %v454_v61 }
 0x37f   :  { %vm456_vm11 = vcmp.eq.f32.partialorder %v455_v62, 6.0 }
 0x380   :  { %v457_v50 = vsel %vm456_vm11, 0.0, %v455_v62 }
 0x381   :  { %v458_v63 = vand.u32 2147483647, %v457_v50 }
 0x383   :  { %v460_v0 = vor.u32 %v459_v48, %v458_v63 }
 0x385   :  { %vm461_vm12 = vcmp.ne.f32.partialorder %v460_v0, 0.0  ;;  %vm462_vm13 = vcmp.lt.f32.partialorder %v460_v0, 0.0  ;;  %v464_v1 = vadd.f32 6.0, %v460_v0 }
 0x386   :  { %vm463_vm14 = vmand %vm462_vm13, %vm461_vm12 }
 0x387   :  { %v465_v2 = vsel %vm463_vm14, %v464_v1, %v460_v0 }
 0x388   :  { %v467_v3 = vadd.f32 5.0, %v465_v2  ;;  %v490_v4 = vadd.f32 3.0, %v465_v2  ;;  %v513_v5 = vadd.f32 1.0, %v465_v2 }
 0x38a   :  { %v468_v6 = vand.u32 2147483647, %v467_v3  ;;  %v491_v7 = vand.u32 2147483647, %v490_v4  ;;  %v514_v8 = vand.u32 2147483647, %v513_v5 }
 0x38b   :  { %v477_v23 = vand.u32 2147483648, %v467_v3  ;;  %v500_v27 = vand.u32 2147483648, %v490_v4  ;;  %v523_v30 = vand.u32 2147483648, %v513_v5 }
 0x38c   :  { %v470_v9 = vmul.f32 0.16666667, %v468_v6  ;;  %v493_v10 = vmul.f32 0.16666667, %v491_v7  ;;  %v516_v11 = vmul.f32 0.16666667, %v514_v8 }
 0x38e   :  { %v471_v12 = vfloor.f32 %v470_v9  ;;  %v494_v13 = vfloor.f32 %v493_v10  ;;  %v517_v14 = vfloor.f32 %v516_v11 }
 0x390   :  { %v472_v15 = vmul.f32 6.0, %v471_v12  ;;  %v495_v16 = vmul.f32 6.0, %v494_v13  ;;  %v518_v17 = vmul.f32 6.0, %v517_v14 }
 0x392   :  { %v473_v18 = vsub.f32 %v468_v6, %v472_v15  ;;  %v496_v19 = vsub.f32 %v491_v7, %v495_v16  ;;  %v519_v20 = vsub.f32 %v514_v8, %v518_v17 }
 0x394   :  { %vm474_vm15 = vcmp.eq.f32.partialorder %v473_v18, 6.0  ;;  %vm497_vm0 = vcmp.eq.f32.partialorder %v496_v19, 6.0  ;;  %vm520_vm2 = vcmp.eq.f32.partialorder %v519_v20, 6.0 }
 0x395   :  { %v475_v21 = vsel %vm474_vm15, 0.0, %v473_v18  ;;  %v498_v24 = vsel %vm497_vm0, 0.0, %v496_v19  ;;  %v521_v28 = vsel %vm520_vm2, 0.0, %v519_v20 }
 0x396   :  { %v476_v25 = vand.u32 2147483647, %v475_v21  ;;  %v499_v26 = vand.u32 2147483647, %v498_v24  ;;  %v522_v29 = vand.u32 2147483647, %v521_v28 }
 0x398   :  { %v478_v31 = vor.u32 %v477_v23, %v476_v25  ;;  %v501_v32 = vor.u32 %v500_v27, %v499_v26  ;;  %v524_v35 = vor.u32 %v523_v30, %v522_v29 }
 0x39a   :  { %vm479_vm3 = vcmp.ne.f32.partialorder %v478_v31, 0.0  ;;  %vm480_vm4 = vcmp.lt.f32.partialorder %v478_v31, 0.0  ;;  %v482_v36 = vadd.f32 6.0, %v478_v31  ;;  %vm502_vm5 = vcmp.ne.f32.partialorder %v501_v32, 0.0 }
 0x39b   :  { %vm481_vm6 = vmand %vm480_vm4, %vm479_vm3  ;;  %vm503_vm7 = vcmp.lt.f32.partialorder %v501_v32, 0.0  ;;  %v505_v37 = vadd.f32 6.0, %v501_v32  ;;  %vm525_vm8 = vcmp.ne.f32.partialorder %v524_v35, 0.0  ;;  %vm526_vm9 = vcmp.lt.f32.partialorder %v524_v35, 0.0 }
 0x39c   :  { %v483_v38 = vsel %vm481_vm6, %v482_v36, %v478_v31  ;;  %vm504_vm10 = vmand %vm503_vm7, %vm502_vm5  ;;  %v528_v39 = vadd.f32 6.0, %v524_v35 }
 0x39d   :  { %v484_v40 = vsub.f32 4.0, %v483_v38  ;;  %v506_v41 = vsel %vm504_vm10, %v505_v37, %v501_v32  ;;  %vm527_vm11 = vmand %vm526_vm9, %vm525_vm8 }
 0x39e   :  { %v507_v42 = vsub.f32 4.0, %v506_v41  ;;  %v529_v43 = vsel %vm527_vm11, %v528_v39, %v524_v35 }
 0x39f   :  { %v485_v34 = vmin.f32 %v483_v38, %v484_v40  ;;  %v530_v45 = vsub.f32 4.0, %v529_v43 }
 0x3a0   :  { %v508_v46 = vmin.f32 %v506_v41, %v507_v42 }
 0x3a1   :  { %v486_v47 = vmax.f32 %v485_v34, 0.0  ;;  %v531_v49 = vmin.f32 %v529_v43, %v530_v45 }
 0x3a2   :  { %v509_v51 = vmax.f32 %v508_v46, 0.0 }
 0x3a3   :  { %v487_v53 = vmin.f32 %v486_v47, 1.0  ;;  %v532_v54 = vmax.f32 %v531_v49, 0.0 }
 0x3a4   :  { %v510_v55 = vmin.f32 %v509_v51, 1.0 }
 0x3a5   :  { %v488_v56 = vmul.f32 %v487_v53, %v466_v52  ;;  %v533_v57 = vmin.f32 %v532_v54, 1.0 }
 0x3a6   :  { %v511_v58 = vmul.f32 %v510_v55, %v466_v52 }
 0x3a7   :  { %v489_v59 = vsub.f32 %v767_v22, %v488_v56  ;;  %v534_v60 = vmul.f32 %v533_v57, %v466_v52 }
 0x3a8   :  { %v512_v61 = vsub.f32 %v767_v22, %v511_v58 }
 0x3a9   :  { %v535_v62 = vsub.f32 %v767_v22, %v534_v60  ;;  %v584_v50 = vadd.f32 -0.485, %v489_v59 }
 0x3aa   :  { %v585_v63 = vadd.f32 -0.456, %v512_v61 }
 0x3ab   :  { %v537_v48 = vmul.f32 4.366812, %v584_v50  ;;  %v587_v0 = vadd.f32 -0.406, %v535_v62 }
 0x3ac   :  { %v540_v1 = vmul.f32 4.464286, %v585_v63 }
 0x3ad   :  { %538 = vst.msk [vmem:[%s798_s4] sm:$0xff] %vm47_vm1, %v537_v48  ;;  %v544_v2 = vmul.f32 4.4444447, %v587_v0 }
 0x3ae   :  { %586 = vst.msk [vmem:[%s798_s4 + $0x8] sm:$0xff] %vm47_vm1, %v540_v1 }
 0x3af   :  { %588 = vst.msk [vmem:[%s798_s4 + $0x10] sm:$0xff] %vm47_vm1, %v544_v2 }

</bundles_post_ra>
